<compile_context>
chip_gen: v7x
topology: tpu7x:2x2x1
jax: 0.10.0
libtpu: 0.0.40
codegen_flags: <defaults>
</compile_context>

<pallas_src>
import jax
import jax.numpy as jnp
from jax.experimental import pallas as pl
from jax.experimental.pallas import tpu as pltpu

EPSILON = 1e-4


def _adconcat3_kernel(w_ref, x0_ref, x1_ref, x2_ref, o_ref):
    # w_ref : (3,) pre-normalized weights in SMEM.
    # x*_ref: (Nb, C, HW_tile) VMEM blocks.
    # o_ref : (Nb, 3, C, HW_tile) VMEM block -- branch index is a major dim,
    #         so each write below is a full, sublane/lane-dense (C, HW_tile)
    #         slab (no masked partial stores at channel offset C).
    o_ref[:, 0, :, :] = (x0_ref[...] * w_ref[0]).astype(o_ref.dtype)
    o_ref[:, 1, :, :] = (x1_ref[...] * w_ref[1]).astype(o_ref.dtype)
    o_ref[:, 2, :, :] = (x2_ref[...] * w_ref[2]).astype(o_ref.dtype)


def _choose_tiling(N, C, HW, dtype_bytes, target_block_bytes=1 << 20):
    """Pick (Nb, hw_tile) so one input block is ~target_block_bytes."""
    # Lane-dim tile: full HW unless a single sample already exceeds the target,
    # in which case split HW into a divisor that is a multiple of 128.
    hw_tile = HW
    if C * HW * dtype_bytes > target_block_bytes and HW % 128 == 0:
        best = 128
        for d in range(128, HW + 1, 128):
            if HW % d == 0 and C * d * dtype_bytes <= target_block_bytes:
                best = d
        hw_tile = best

    per_block_sample = C * hw_tile * dtype_bytes
    nb = int(max(1, min(N, target_block_bytes // max(per_block_sample, 1))))
    while N % nb != 0:          # Nb must evenly divide N
        nb -= 1

    # Keep at least 2 grid steps when N >= 2 so v7x's two TensorCores both get
    # work (near-zero cost on single-TC v5e/v6e).
    n_steps = (N // nb) * (HW // hw_tile)
    if N >= 2 and n_steps < 2:
        nb = max(1, N // 2)
        while N % nb != 0:
            nb -= 1
    return nb, hw_tile


def adconcat3(w, x0, x1, x2):
    """w: (3,) f32 parameter; x0, x1, x2: (N, C, H, W) tensors (same shape)."""
    N, C, H, W = x0.shape
    assert x1.shape == x0.shape and x2.shape == x0.shape
    HW = H * W
    dtype_bytes = jnp.dtype(x0.dtype).itemsize

    # Hoisted weight normalization (one tiny XLA op, not per grid step).
    weight = (w / (jnp.sum(w) + EPSILON)).astype(jnp.float32)

    x0f = x0.reshape(N, C, HW)
    x1f = x1.reshape(N, C, HW)
    x2f = x2.reshape(N, C, HW)

    nb, hw_tile = _choose_tiling(N, C, HW, dtype_bytes)
    grid = (N // nb, HW // hw_tile)

    x_spec = pl.BlockSpec((nb, C, hw_tile), lambda n, h: (n, 0, h))
    # Output viewed as (N, 3, C, HW): each branch's store is a full slab.
    out_spec = pl.BlockSpec((nb, 3, C, hw_tile), lambda n, h: (n, 0, 0, h))

    # Double-buffered VMEM footprint: 2 * (3 inputs + 1 output(=3x input)) blocks.
    in_block_bytes = nb * C * hw_tile * dtype_bytes
    vmem_needed = 12 * in_block_bytes
    vmem_limit = int(min(max(vmem_needed + (4 << 20), 16 << 20), 48 << 20))

    total_out_elems = N * 3 * C * HW
    cost = pl.CostEstimate(
        flops=total_out_elems,                            # one mul per output elem
        transcendentals=0,
        bytes_accessed=2 * total_out_elems * dtype_bytes,  # read inputs + write out
    )

    out4 = pl.pallas_call(
        _adconcat3_kernel,
        out_shape=jax.ShapeDtypeStruct((N, 3, C, HW), x0.dtype),
        grid=grid,
        in_specs=[
            pl.BlockSpec(memory_space=pltpu.SMEM),   # (3,) normalized weights
            x_spec,
            x_spec,
            x_spec,
        ],
        out_specs=out_spec,
        compiler_params=pltpu.CompilerParams(
            dimension_semantics=("parallel", "parallel"),
            vmem_limit_bytes=vmem_limit,
        ),
        cost_estimate=cost,
    )(weight, x0f, x1f, x2f)

    # (N, 3, C, HW) -> (N, 3C, H, W): contiguous row-major relabel of the same
    # bytes. (If C is far from a multiple of 8 and this shows up as a relayout
    # copy in profiles, pad C inside the kernel instead.)
    return out4.reshape(N, 3 * C, H, W)


if __name__ == "__main__":
    key = jax.random.PRNGKey(0)
    k0, k1, k2 = jax.random.split(key, 3)

    N, C, H, W = 2, 4, 16, 16
    x0 = jax.random.normal(k0, (N, C, H, W), dtype=jnp.float32)
    x1 = jax.random.normal(k1, (N, C, H, W), dtype=jnp.float32)
    x2 = jax.random.normal(k2, (N, C, H, W), dtype=jnp.float32)

    # Deterministic parameter init, matching nn.Parameter(torch.ones(3)).
    w = jnp.ones((3,), dtype=jnp.float32)

    out = adconcat3(w, x0, x1, x2)
    out = jax.block_until_ready(out)

    # Pure-JAX reference check.
    weight = w / (jnp.sum(w) + EPSILON)
    ref = jnp.concatenate(
        [weight[0] * x0, weight[1] * x1, weight[2] * x2], axis=1
    )
    assert out.shape == (N, 3 * C, H, W), out.shape
    assert jnp.allclose(out, ref, atol=1e-6, rtol=1e-6), "mismatch vs reference"

    print("KERNEL_OK")
</pallas_src>

<mosaic_0001>
module attributes {stable_mosaic.version = 11 : i64} {
  func.func @_adconcat3_kernel(%arg0: i32, %arg1: i32, %arg2: memref<3xf32, #tpu.memory_space<smem>>, %arg3: memref<1x4x256xf32, #tpu.memory_space<vmem>>, %arg4: memref<1x4x256xf32, #tpu.memory_space<vmem>>, %arg5: memref<1x4x256xf32, #tpu.memory_space<vmem>>, %arg6: memref<1x3x4x256xf32, #tpu.memory_space<vmem>>) attributes {dimension_semantics = [#tpu.dimension_semantics<parallel>, #tpu.dimension_semantics<parallel>], iteration_bounds = array<i64: 2, 1>, scalar_prefetch = 0 : i64, scratch_operands = 0 : i64, tpu.core_type = #tpu.core_type<tc>, window_params = [{transform_indices = @transform_0, window_bounds = array<i64: 3>}, {transform_indices = @transform_1, window_bounds = array<i64: 1, 4, 256>}, {transform_indices = @transform_2, window_bounds = array<i64: 1, 4, 256>}, {transform_indices = @transform_3, window_bounds = array<i64: 1, 4, 256>}, {transform_indices = @transform_4, window_bounds = array<i64: 1, 3, 4, 256>}]} {
    %c0 = arith.constant 0 : index
    %c0_0 = arith.constant 0 : index
    %c0_1 = arith.constant 0 : index
    %0 = vector.load %arg3[%c0, %c0_0, %c0_1] : memref<1x4x256xf32, #tpu.memory_space<vmem>>, vector<1x4x256xf32>
    %c0_2 = arith.constant 0 : index
    %1 = memref.load %arg2[%c0_2] : memref<3xf32, #tpu.memory_space<smem>>
    %2 = vector.broadcast %1 : f32 to vector<1x4x256xf32>
    %3 = arith.mulf %0, %2 : vector<1x4x256xf32>
    %c0_3 = arith.constant 0 : index
    %c0_4 = arith.constant 0 : index
    %c0_5 = arith.constant 0 : index
    %c0_6 = arith.constant 0 : index
    %4 = vector.load %arg6[%c0_3, %c0_4, %c0_5, %c0_6] : memref<1x3x4x256xf32, #tpu.memory_space<vmem>>, vector<1x1x4x256xf32>
    %5 = vector.shape_cast %4 : vector<1x1x4x256xf32> to vector<1x4x256xf32>
    %6 = vector.shape_cast %3 : vector<1x4x256xf32> to vector<1x1x4x256xf32>
    tpu.vector_store %arg6[%c0_3, %c0_4, %c0_5, %c0_6], %6 {strides = array<i32>} : memref<1x3x4x256xf32, #tpu.memory_space<vmem>>, vector<1x1x4x256xf32>,
    %c0_7 = arith.constant 0 : index
    %c0_8 = arith.constant 0 : index
    %c0_9 = arith.constant 0 : index
    %7 = vector.load %arg4[%c0_7, %c0_8, %c0_9] : memref<1x4x256xf32, #tpu.memory_space<vmem>>, vector<1x4x256xf32>
    %c1 = arith.constant 1 : index
    %8 = memref.load %arg2[%c1] : memref<3xf32, #tpu.memory_space<smem>>
    %9 = vector.broadcast %8 : f32 to vector<1x4x256xf32>
    %10 = arith.mulf %7, %9 : vector<1x4x256xf32>
    %c0_10 = arith.constant 0 : index
    %c1_11 = arith.constant 1 : index
    %c0_12 = arith.constant 0 : index
    %c0_13 = arith.constant 0 : index
    %11 = vector.load %arg6[%c0_10, %c1_11, %c0_12, %c0_13] : memref<1x3x4x256xf32, #tpu.memory_space<vmem>>, vector<1x1x4x256xf32>
    %12 = vector.shape_cast %11 : vector<1x1x4x256xf32> to vector<1x4x256xf32>
    %13 = vector.shape_cast %10 : vector<1x4x256xf32> to vector<1x1x4x256xf32>
    tpu.vector_store %arg6[%c0_10, %c1_11, %c0_12, %c0_13], %13 {strides = array<i32>} : memref<1x3x4x256xf32, #tpu.memory_space<vmem>>, vector<1x1x4x256xf32>,
    %c0_14 = arith.constant 0 : index
    %c0_15 = arith.constant 0 : index
    %c0_16 = arith.constant 0 : index
    %14 = vector.load %arg5[%c0_14, %c0_15, %c0_16] : memref<1x4x256xf32, #tpu.memory_space<vmem>>, vector<1x4x256xf32>
    %c2 = arith.constant 2 : index
    %15 = memref.load %arg2[%c2] : memref<3xf32, #tpu.memory_space<smem>>
    %16 = vector.broadcast %15 : f32 to vector<1x4x256xf32>
    %17 = arith.mulf %14, %16 : vector<1x4x256xf32>
    %c0_17 = arith.constant 0 : index
    %c2_18 = arith.constant 2 : index
    %c0_19 = arith.constant 0 : index
    %c0_20 = arith.constant 0 : index
    %18 = vector.load %arg6[%c0_17, %c2_18, %c0_19, %c0_20] : memref<1x3x4x256xf32, #tpu.memory_space<vmem>>, vector<1x1x4x256xf32>
    %19 = vector.shape_cast %18 : vector<1x1x4x256xf32> to vector<1x4x256xf32>
    %20 = vector.shape_cast %17 : vector<1x4x256xf32> to vector<1x1x4x256xf32>
    tpu.vector_store %arg6[%c0_17, %c2_18, %c0_19, %c0_20], %20 {strides = array<i32>} : memref<1x3x4x256xf32, #tpu.memory_space<vmem>>, vector<1x1x4x256xf32>,
    return
  }
  func.func @transform_0(%arg0: i32, %arg1: i32) -> i32 {
    %c0_i32 = arith.constant 0 : i32
    %c0_i32_0 = arith.constant 0 : i32
    return %c0_i32 : i32
  }
  func.func @transform_1(%arg0: i32, %arg1: i32) -> (i32, i32, i32) {
    %c0_i32 = arith.constant 0 : i32
    %c0_i32_0 = arith.constant 0 : i32
    return %arg0, %c0_i32, %arg1 : i32, i32, i32
  }
  func.func @transform_2(%arg0: i32, %arg1: i32) -> (i32, i32, i32) {
    %c0_i32 = arith.constant 0 : i32
    %c0_i32_0 = arith.constant 0 : i32
    return %arg0, %c0_i32, %arg1 : i32, i32, i32
  }
  func.func @transform_3(%arg0: i32, %arg1: i32) -> (i32, i32, i32) {
    %c0_i32 = arith.constant 0 : i32
    %c0_i32_0 = arith.constant 0 : i32
    return %arg0, %c0_i32, %arg1 : i32, i32, i32
  }
  func.func @transform_4(%arg0: i32, %arg1: i32) -> (i32, i32, i32, i32) {
    %c0_i32 = arith.constant 0 : i32
    %c0_i32_0 = arith.constant 0 : i32
    %c0_i32_1 = arith.constant 0 : i32
    return %arg0, %c0_i32, %c0_i32_0, %arg1 : i32, i32, i32, i32
  }
}

</mosaic_0001>

<bundles_post_ra>
// kernel: tpu_custom_call.1
= control target key start
LH: loop header
LB: loop body
LE: loop exit
PB: predicated region body
PF: predicated region fallthrough
CT: control target
= control target key end

     0   :  { %s1140_s0 = inlined_call_operand.hbm [shape: f32[3], index: 0, kind: input, shape index: {}]   ;;  %s1141_s1 = inlined_call_operand.hbm [shape: f32[2,4,256], index: 1, kind: input, shape index: {}]   ;;  %s1142_s2 = inlined_call_operand.hbm [shape: f32[2,4,256], index: 2, kind: input, shape index: {}]   ;;  %s1143_s3 = inlined_call_operand.hbm [shape: f32[2,4,256], index: 3, kind: input, shape index: {}]   ;;  %s1144_s4 = inlined_call_operand.hbm [shape: f32[2,3,4,256], index: 4, kind: output, shape index: {}]  }
   0x1   :  { %1157 = sst [smem:[#allocation20_spill]] %s1142_s2 }
   0x2   :  { %9 = vsyncpa [#allocation5], 0 }
   0x3   :  { %10 = vsyncpa [#allocation3], 0 }
   0x4   :  { %12 = vsyncpa [#allocation3 + $0x1], 0 }
   0x5   :  { %13 = vsyncpa [#allocation8], 0 }
   0x6   :  { %15 = vsyncpa [#allocation8 + $0x1], 0 }
   0x7   :  { %16 = vsyncpa [#allocation4], 0 }
   0x8   :  { %18 = vsyncpa [#allocation4 + $0x1], 0  ;;  %s853_s15 = smov 0   ;;  %s855_s16 = smov 0  }
   0x9   :  { %s857_s17 = smov 0   ;;  %s859_s18 = smov 0  }
   0xa   :  { %s861_s19 = smov 0   ;;  %s863_s20 = smov 0  }
   0xb LB: > { %1158 = sst [smem:[#allocation15_spill]] %s815_s19  ;;  %s36_s21 = sadd.s32 1, %s815_s19  ;;  %s819_s20 = sphi %s863_s20, %s24_s20   ;;  %s815_s19 = sphi %s861_s19, %s1185_s19   ;;  %s811_s18 = sphi %s859_s18, %s1184_s18   ;;  %s807_s17 = sphi %s857_s17, %s1188_s17   ;;  %s803_s16 = sphi %s855_s16, %s1187_s16   ;;  %s799_s15 = sphi %s853_s15, %s1186_s15  }
   0xc   : > { %1159 = sst [smem:[#allocation16_spill]] %s819_s20  ;;  %s66_s22 = sadd.s32 1, %s807_s17 }
   0xd   : > { %p38_p0 = scmp.ge.s32.totalorder %s36_s21, 2  ;;  %p1145_p1 = scmp.ne.s32.totalorder %s807_s17, %s803_s16 }
   0xe   : > { %p74_p2 = scmp.eq.s32.totalorder %s819_s20, 0  ;;  %p572_p5 = scmp.lt.s32.totalorder %s819_s20, 2 }
   0xf   : > { %s1190_s21 = smov (%p38_p0, %s36_s21), 0  ;;  %s196_s24 = sand.u32 1, %s807_s17  }
  0x10   : > { %1160 = sst [smem:[#allocation17_spill]] %s1190_s21  ;;  %p75_p4 = por %p74_p2, %p1145_p1 }
  0x11   : > { %s61_s23 = ssub.s32 %s815_s19, %s1190_s21  ;;  %s900_s25 = sshll.u32 %s196_s24, 3 }
  0x12   : > { %p64_p6 = scmp.eq.s32.totalorder %s61_s23, 0  ;;  %s903_s26 = sshll.u32 %s815_s19, 7 }
  0x13   : > { %p905_p7 = pnand %p572_p5, %p75_p4  ;;  %s217_s29 = sand.u32 1, %s819_s20  }
  0x14   : > { %s910_s28 = scalar_select %p64_p6, %s807_s17, %s66_s22  }
  0x15   : > { %s1161_s27 = scalar_select %p905_p7, 1, 0 }
  0x16   : > { %1162 = sst [smem:[#allocation18_spill]] %s910_s28  ;;  %s1163_s2 = sld [smem:[#allocation20_spill]] }
  0x17   : > { %s221_s7 = scalar_lea.vmem [#allocation7], %s900_s25  ;;  %s922_s9 = scalar_lea.sflag [#allocation8], %s217_s29 }
  0x18   : > { %s231_s8 = sshll.u32 %s221_s7, 4  ;;  %p928_p9 = pneg %p905_p7  ;;  %s920_s8 = int_to_ptr.vmem [resolvable:$true] %s231_s8 }
  0x1c   : > { %s917_s6 = scalar_lea.hbm %s1163_s2, %s903_s26  ;;  %s631_s14 = scalar_lea.hbm %s1163_s2, 256 }
  0x1d   : > { %s626_s10 = scalar_lea.hbm %s917_s6, 128  ;;  %p632_p12 = scmp.lt.u32.totalorder %s917_s6, %s1163_s2 }
  0x1e   : > { %p627_p8 = scmp.ne.s32.totalorder %s917_s6, %s626_s10  ;;  %p633_p13 = scmp.lt.u32.totalorder %s631_s14, %s626_s10 }
  0x1f   : > { %p635_p2 = scmp.lt.u32.totalorder %s626_s10, %s917_s6 }
  0x20   : > { %p629_p10 = pnand %p928_p9, %p627_p8  ;;  %p634_p0 = por %p633_p13, %p632_p12 }
  0x22   : > { %p630_p11 = pneg %p629_p10  ;;  %p636_p4 = por %p635_p2, %p634_p0 }
  0x24   : > { %p637_p5 = pnand %p636_p4, %p630_p11 }
  0x26   : > { %640 = shalt.err (!%p637_p5)
}
  0x27   : > { %s641_s29 = scalar_lea.vmem %s920_s8, 128  ;;  %s821_s30 = smov [#allocation7]  }
  0x28   : > { %p642_p6 = scmp.ne.s32.totalorder %s920_s8, %s641_s29  ;;  %s646_s5 = sshll.u32 %s821_s30, 4  ;;  %s647_s5 = int_to_ptr.vmem [resolvable:$false] %s646_s5 }
  0x29   : > { %s648_s7 = scalar_lea.vmem %s647_s5, 256  ;;  %p649_p3 = scmp.lt.s32.totalorder %s920_s8, %s647_s5 }
  0x2a   : > { %p644_p8 = pnand %p642_p6, %p928_p9  ;;  %p650_p1 = scmp.lt.s32.totalorder %s648_s7, %s641_s29 }
  0x2c   : > { %p645_p10 = pneg %p644_p8  ;;  %p651_p12 = por %p650_p1, %p649_p3 }
  0x2e   : > { %p652_p13 = pnand %p651_p12, %p645_p10 }
  0x30   : > { %655 = shalt.err (!%p652_p13)
}
  0x31   : > { %563 = dma.hbm_to_vmem [thread:$0]  (!%p905_p7), %s917_s6, 128, %s920_s8, %s922_s9  }
  0x32   : > { %s953_s10 = sadd.s32 4294967295, %s819_s20   ;;  %s511_s12 = sadd.s32 4294967294, %s819_s20  }
  0x33   : > { %p79_p1 = scmp.ne.s32.totalorder %s803_s16, %s799_s15  ;;  %p1151_p3 = scmp.eq.s32.totalorder %s953_s10, 0 }
  0x34   : > { %p161_p11 = scmp.eq.s32.totalorder %s953_s10, 1  ;;  %p167_p0 = scmp.eq.s32.totalorder %s511_s12, 1 }
  0x35   : > { %p512_p2 = scmp.ge.s32.totalorder %s819_s20, 1  ;;  %p963_p4 = por %p1151_p3, %p79_p1 }
  0x36   : > { %p1166_p5 = scmp.ne.s32.totalorder %s807_s17, %s803_s16  ;;  %p974_p8 = por %p167_p0, %p79_p1 }
  0x37   : > { %s1165_s13 = scalar_select %p963_p4, 1, 0 }
  0x38   : > { %p970_p6 = por %p161_p11, %p1166_p5  ;;  %p174_p10 = scmp.lt.s32.totalorder %s819_s20, 3 }
  0x39   : > { %s1168_s8 = scalar_select %p974_p8, 1, 0 }
  0x3a   : > { %s1167_s6 = scalar_select %p970_p6, 1, 0 }
  0x3b   : > { %1169 = sst [smem:[#allocation19_spill]] %s1168_s8  ;;  %p979_p12 = pnand %p512_p2, %p174_p10 }
  0x3c   : > { %s987_s29 = scalar_lea.hbm %s1141_s1, %s903_s26  ;;  %s200_s30 = scalar_lea.vmem [#allocation6], %s900_s25 }
  0x3d   : > { %s1170_s14 = scalar_select %p979_p12, 1, 0 }
  0x3e   : > { %p553_p13 = pneg %p979_p12  ;;  %s210_s5 = sshll.u32 %s200_s30, 4  ;;  %s992_s5 = int_to_ptr.vmem [resolvable:$true] %s210_s5 }
  0x3f   : > { %s1004_s23 = scalar_lea.hbm %s1143_s3, %s903_s26  ;;  %s197_s2 = scalar_lea.sflag [#allocation3], %s196_s24 }
  0x40   : > { %p996_p1 = pnand %p553_p13, %p1151_p3  ;;  %s656_s21 = scalar_lea.hbm %s987_s29, 128 }
  0x41   : > { %p657_p11 = scmp.ne.s32.totalorder %s987_s29, %s656_s21  ;;  %s661_s28 = scalar_lea.hbm %s1141_s1, 256 }
  0x42   : > { %s1171_s7 = scalar_select %p996_p1, 1, 0 }
  0x43   : > { %p659_p0 = pnand %p657_p11, %p928_p9  ;;  %p662_p5 = scmp.lt.u32.totalorder %s987_s29, %s1141_s1 }
  0x44   : > { %p663_p10 = scmp.lt.u32.totalorder %s661_s28, %s656_s21  ;;  %p665_p3 = scmp.lt.u32.totalorder %s656_s21, %s987_s29 }
  0x45   : > { %p660_p2 = pneg %p659_p0 }
  0x46   : > { %p664_p13 = por %p663_p10, %p662_p5 }
  0x48   : > { %p666_p8 = por %p665_p3, %p664_p13 }
  0x4a   : > { %p667_p6 = pnand %p666_p8, %p660_p2 }
  0x4c   : > { %670 = shalt.err (!%p667_p6)
}
  0x4d   : > { %s671_s24 = scalar_lea.vmem %s992_s5, 128  ;;  %s822_s19 = smov [#allocation6]  }
  0x4e   : > { %p672_p11 = scmp.ne.s32.totalorder %s992_s5, %s671_s24  ;;  %s676_s26 = sshll.u32 %s822_s19, 4  ;;  %s677_s26 = int_to_ptr.vmem [resolvable:$false] %s676_s26 }
  0x4f   : > { %s678_s20 = scalar_lea.vmem %s677_s26, 256  ;;  %p679_p12 = scmp.lt.s32.totalorder %s992_s5, %s677_s26 }
  0x50   : > { %p674_p0 = pnand %p672_p11, %p928_p9  ;;  %p680_p1 = scmp.lt.s32.totalorder %s678_s20, %s671_s24 }
  0x52   : > { %p675_p4 = pneg %p674_p0  ;;  %p681_p5 = por %p680_p1, %p679_p12 }
  0x54   : > { %p682_p10 = pnand %p681_p5, %p675_p4 }
  0x56   : > { %685 = shalt.err (!%p682_p10)
}
  0x57   : > { %560 = dma.hbm_to_vmem [thread:$0]  (!%p905_p7), %s987_s29, 128, %s992_s5, %s197_s2  }
  0x58   : > { %s242_s21 = scalar_lea.vmem [#allocation9], %s900_s25  ;;  %s686_s22 = scalar_lea.hbm %s1140_s0, 16 }
  0x59   : > { %s252_s28 = sshll.u32 %s242_s21, 4  ;;  %p687_p3 = scmp.ne.s32.totalorder %s1140_s0, %s686_s22  ;;  %s253_s28 = int_to_ptr.vmem [resolvable:$true] %s252_s28 }
  0x5a   : > { %p1172_p6 = scmp.ne.s32.totalorder %s1171_s7, 0  ;;  %p693_p1 = scmp.lt.u32.totalorder %s686_s22, %s1140_s0 }
  0x5c   : > { %p688_p4 = pneg %p1172_p6 }
  0x5e   : > { %p689_p8 = pnand %p688_p4, %p687_p3 }
  0x60   : > { %p690_p12 = pneg %p689_p8 }
  0x62   : > { %p695_p2 = pnand %p693_p1, %p690_p12 }
  0x64   : > { %698 = shalt.err (!%p695_p2)
}
  0x65   : > { %s823_s2 = smov [#allocation2]   ;;  %s699_s5 = scalar_lea.hbm %s1004_s23, 128 }
  0x66   : > { %556 = dma.hbm_to_smem (!%p1172_p6), %s1140_s0, 16, %s823_s2, [#allocation5]  }
  0x67   : > { %p700_p13 = scmp.ne.s32.totalorder %s1004_s23, %s699_s5  ;;  %s704_s8 = scalar_lea.hbm %s1143_s3, 256 }
  0x68   : > { %p705_p5 = scmp.lt.u32.totalorder %s1004_s23, %s1143_s3  ;;  %p706_p10 = scmp.lt.u32.totalorder %s704_s8, %s699_s5 }
  0x69   : > { %p702_p11 = pnand %p700_p13, %p928_p9  ;;  %p708_p4 = scmp.lt.u32.totalorder %s699_s5, %s1004_s23 }
  0x6a   : > { %p707_p3 = por %p706_p10, %p705_p5 }
  0x6b   : > { %p703_p0 = pneg %p702_p11 }
  0x6c   : > { %p709_p8 = por %p708_p4, %p707_p3 }
  0x6e   : > { %p710_p12 = pnand %p709_p8, %p703_p0 }
  0x70   : > { %713 = shalt.err (!%p710_p12)
}
  0x71   : > { %s714_s22 = scalar_lea.vmem %s253_s28, 128  ;;  %s824_s30 = smov [#allocation9]  }
  0x72   : > { %p715_p6 = scmp.ne.s32.totalorder %s253_s28, %s714_s22  ;;  %s719_s19 = sshll.u32 %s824_s30, 4  ;;  %s720_s19 = int_to_ptr.vmem [resolvable:$false] %s719_s19 }
  0x73   : > { %s721_s24 = scalar_lea.vmem %s720_s19, 256  ;;  %p722_p13 = scmp.lt.s32.totalorder %s253_s28, %s720_s19 }
  0x74   : > { %p717_p1 = pnand %p715_p6, %p928_p9  ;;  %p723_p11 = scmp.lt.s32.totalorder %s721_s24, %s714_s22 }
  0x76   : > { %p718_p2 = pneg %p717_p1  ;;  %p724_p7 = por %p723_p11, %p722_p13 }
  0x78   : > { %p725_p5 = pnand %p724_p7, %p718_p2 }
  0x7a   : > { %728 = shalt.err (!%p725_p5)
}
  0x7b   : > { %p1173_p10 = scmp.ne.s32.totalorder %s1161_s27, 0  ;;  %p1174_p0 = scmp.ne.s32.totalorder %s1170_s14, 0 }
  0x7c   : > { %p1175_p9 = scmp.eq.s32.totalorder (!%p1174_p0), %s953_s10, 0 }
  0x7d   : > { %566 = dma.hbm_to_vmem [thread:$0]  (!%p1173_p10), %s1004_s23, 128, %s253_s28, %s922_s9  }
  0x7e   : > { %261 = sbr.rel (%p1174_p0) target bundleno = 172 (0xac), region = 36 }
  0x85   : > { %782 = dma.done.wait (%p1175_p9), [#allocation5], 16   ;;  %p1176_p3 = pmov %p1175_p9 }
  0x86   : > { %s1071_s11 = sand.u32 1, %s803_s16   ;;  %p1177_p7 = scmp.ne.s32.totalorder %s1165_s13, 0 }
  0x87   : > { %784 = vsyncadd (%p1176_p3), [#allocation5], 4294967280  ;;  %s526_s26 = sshll.u32 %s1071_s11, 3  ;;  %s268_s27 = scalar_lea.sflag [#allocation3], %s1071_s11 }
  0x88   : > { %s271_s2 = scalar_lea.vmem [#allocation6], %s526_s26 }
  0x89   : > { %786 = dma.done.wait (%p1177_p7), %s268_s27, 128  }
  0x8a   : > { %788 = vsyncadd (%p1177_p7), %s268_s27, 4294967168  ;;  %s276_s9 = sand.u32 1, %s953_s10   ;;  %s280_s23 = scalar_lea.vmem [#allocation7], %s526_s26 }
  0x8b   : > { %s277_s14 = scalar_lea.sflag [#allocation8], %s276_s9 }
  0x8c   : > { %790 = dma.done.wait (%p1177_p7), %s277_s14, 256  }
  0x8d   : > { %792 = vsyncadd (%p1177_p7), %s277_s14, 4294967040  ;;  %s289_s28 = scalar_lea.vmem [#allocation9], %s526_s26 }
  0x8e   : > { %294 = sfence }
  0x8f   : > { %s539_s25 = smul.u32 24, %s1071_s11  ;;  %s330_s29 = sld [smem:[#allocation2]]  ;;  %v329_v0 = vld [vmem:[%s271_s2] sm:$0xff]  ;;  %v334_v1 = vld [vmem:[%s280_s23] sm:$0xff] }
  0x90   : > { %s529_s5 = sld [smem:[#allocation2 + $0x1]]  ;;  %s531_s20 = sld [smem:[#allocation2 + $0x2]]  ;;  %v340_v2 = vld [vmem:[%s289_s28] sm:$0xff] }
  0x91   : > { %s324_s21 = scalar_lea.vmem [#allocation10], %s539_s25  ;;  %s540_s10 = smul.u32 384, %s811_s18 }
  0x92   : > { %s362_s8 = sshll.u32 %s324_s21, 4  ;;  %s347_s18 = scalar_lea.sflag [#allocation4], %s1071_s11  ;;  %s1086_s8 = int_to_ptr.vmem [resolvable:$true] %s362_s8 }
  0x93   : > { %s1091_s12 = scalar_lea.hbm %s1144_s4, %s540_s10  ;;  %s729_s22 = scalar_lea.vmem %s1086_s8, 384 }
  0x94   : > { %p730_p4 = scmp.ne.s32.totalorder %s1086_s8, %s729_s22  ;;  %p1178_p8 = scmp.ne.s32.totalorder %s1167_s6, 0 }
  0x95   : > { %v331_v3 = vstv %s330_s29  ;;  %s825_s30 = smov [#allocation10]  }
  0x96   : > { %v332_v4 = vmul.f32 %v331_v3, %v329_v0  ;;  %v336_v5 = vstv %s529_s5  ;;  %v342_v6 = vstv %s531_s20  ;;  %p731_p12 = pnand %p730_p4, %p1178_p8  ;;  %s733_s19 = sshll.u32 %s825_s30, 4  ;;  %s734_s19 = int_to_ptr.vmem [resolvable:$false] %s733_s19 }
  0x97   : > { %v337_v7 = vmul.f32 %v336_v5, %v334_v1  ;;  %v343_v8 = vmul.f32 %v342_v6, %v340_v2  ;;  %s735_s24 = scalar_lea.vmem %s734_s19, 768  ;;  %p736_p1 = scmp.lt.s32.totalorder %s1086_s8, %s734_s19 }
  0x98   : > { %333 = vst [vmem:[%s324_s21] sm:$0xff] %v332_v4  ;;  %p732_p6 = pneg %p731_p12  ;;  %p737_p2 = scmp.lt.s32.totalorder %s735_s24, %s729_s22 }
  0x99   : > { %530 = vst [vmem:[%s324_s21 + $0x8] sm:$0xff] %v337_v7  ;;  %532 = vst [vmem:[%s324_s21 + $0x10] sm:$0xff] %v343_v8 }
  0x9a   : > { %p738_p13 = por %p737_p2, %p736_p1 }
  0x9c   : > { %p739_p11 = pnand %p738_p13, %p732_p6 }
  0x9e   : > { %742 = shalt.err (!%p739_p11)
}
  0x9f   : > { %s743_s26 = scalar_lea.hbm %s1091_s12, 384  ;;  %s747_s9 = scalar_lea.hbm %s1144_s4, 768 }
  0xa0   : > { %p744_p5 = scmp.ne.s32.totalorder %s1091_s12, %s743_s26  ;;  %p748_p9 = scmp.lt.u32.totalorder %s1091_s12, %s1144_s4 }
  0xa1   : > { %p749_p3 = scmp.lt.u32.totalorder %s747_s9, %s743_s26  ;;  %p751_p4 = scmp.lt.u32.totalorder %s743_s26, %s1091_s12 }
  0xa2   : > { %p745_p10 = pnand %p744_p5, %p1178_p8 }
  0xa3   : > { %p750_p7 = por %p749_p3, %p748_p9 }
  0xa4   : > { %p746_p0 = pneg %p745_p10 }
  0xa5   : > { %p752_p12 = por %p751_p4, %p750_p7 }
  0xa7   : > { %p753_p6 = pnand %p752_p12, %p746_p0 }
  0xa9   : > { %756 = shalt.err (!%p753_p6)
}
  0xaa   : > { %s826_s28 = smov 128   ;;  %s827_s25 = smov 8  }
  0xab   : > { %551 = dma.vmem_to_hbm [thread:$0]  (%p1178_p8), %s1086_s8, 384, %s1091_s12, %s347_s18, %s826_s28, %s826_s28, %s827_s25  }
  0xac PF: > { %s1179_s29 = sld [smem:[#allocation19_spill]]  ;;  %s1180_s5 = sld [smem:[#allocation16_spill]] }
  0xad   : > { %s377_s20 = sand.u32 1, %s799_s15  }
  0xae   : > { %s378_s21 = scalar_lea.sflag [#allocation4], %s377_s20 }
  0xb2   : > { %p1181_p1 = scmp.ne.s32.totalorder %s1179_s29, 0  ;;  %p1182_p2 = scmp.ge.s32.totalorder %s1180_s5, 2 }
  0xb4   : > { %p568_p13 = pnand %p1182_p2, %p1181_p1 }
  0xb6   : > { %794 = dma.done.wait (!%p568_p13), %s378_s21, 384  }
  0xb7   : > { %796 = vsyncadd (!%p568_p13), %s378_s21, 4294966912  ;;  %s24_s20 = sadd.s32 1, %s1180_s5   ;;  %s1183_s10 = sld [smem:[#allocation18_spill]] }
  0xb8   : > { %p21_p11 = scmp.ge.s32.totalorder %s24_s20, 4   ;;  %s1184_s18 = sld [smem:[#allocation15_spill]] }
  0xb9   : > { %s1185_s19 = sld [smem:[#allocation17_spill]]  ;;  %s1186_s15 = smov %s803_s16 }
  0xba   : > { %s1187_s16 = smov %s807_s17  ;;  %23 = sbr.rel (!%p21_p11) target bundleno = 11 (0xb), region = 112 }
  0xbd   : > { %s1188_s17 = smov %s1183_s10 }
  0xc1   :  { %383 = vsyncpa [#allocation3], 1 }
  0xc2   :  { %385 = vsyncpa [#allocation3 + $0x1], 1 }
  0xc3   :  { %386 = vsyncpa [#allocation8], 1 }
  0xc4   :  { %388 = vsyncpa [#allocation8 + $0x1], 1 }
  0xc5   :  { %389 = vsyncpa [#allocation4], 1 }
  0xc6   :  { %391 = vsyncpa [#allocation4 + $0x1], 1 }
  0xc7   :  { %392 = vsyncpa [#allocation5], 1 }
  0xc8   :  { %394 = vsyncpa [#allocation5 + $0x1], 1 }

</bundles_post_ra>
